<compile_context>
chip_gen: v7x
topology: tpu7x:2x2x1
jax: 0.10.0
libtpu: 0.0.40
codegen_flags: <defaults>
</compile_context>

<pallas_src>
import numpy as np
import jax
import jax.numpy as jnp
from jax import lax
from jax.experimental import pallas as pl
from jax.experimental.pallas import tpu as pltpu

LOSS_WEIGHTS = (3.0, 1.0, 0.2)   # [align, collinear, pivot-cls]
POS_WEIGHT = 2.0                 # BCE pos_weight in point_classification_loss


# ----------------------------------------------------------------------------
# Fused loss kernel: all three loss terms + weighted total, one invocation.
# ----------------------------------------------------------------------------
def _make_dvs_kernel(inv_den, w_align, w_coll, w_cls):
    """Builds the fused loss kernel.

    Input:
      slab_ref : (5, B, N) f32, rows = [pred_x, pred_y, gt_x, gt_y, logits]
    Output:
      out_ref  : (1, 128) f32, lanes 0..3 =
                 [loss_align, loss_collinear, loss_pivot_cls, dvs_loss]

    `inv_den` = 1 / (B * N) is derived from static shapes only (identity
    matching => B*N matched points), so baking it into the trace is safe and
    never causes data-dependent recompiles.
    """
    inv_den = float(inv_den)
    w_align, w_coll, w_cls = float(w_align), float(w_coll), float(w_cls)

    def kernel(slab_ref, out_ref):
        px = slab_ref[0]          # (B, N) pred x
        py = slab_ref[1]          # (B, N) pred y
        gx = slab_ref[2]          # (B, N) gt x (alignment target, identity match)
        gy = slab_ref[3]          # (B, N) gt y
        x = slab_ref[4]           # (B, N) point classification logits

        # ---- keypoint alignment: sum_i |pred[i] - gt[i]| / (B*N) ------------
        align_sum = jnp.sum(jnp.abs(px - gx) + jnp.abs(py - gy))
        loss_align = align_sum * inv_den

        # ---- collinear interpolation loss ------------------------------------
        # Identity matching (M == N) leaves no unmatched points, so the
        # reference's "0 if no collinear points" branch always triggers.
        loss_coll = 0.0

        # ---- BCE with logits, labels == 1 everywhere, pos_weight = 2 ---------
        # softplus(-x) = max(-x, 0) + log1p(exp(-|x|))
        sp_neg = jnp.maximum(-x, 0.0) + jnp.log1p(jnp.exp(-jnp.abs(x)))
        loss_cls = jnp.sum(POS_WEIGHT * sp_neg) * inv_den

        dvs = w_align * loss_align + w_coll * loss_coll + w_cls * loss_cls

        lane = lax.broadcasted_iota(jnp.int32, (1, 128), 1)
        out_ref[...] = (jnp.where(lane == 0, loss_align, 0.0)
                        + jnp.where(lane == 2, loss_cls, 0.0)
                        + jnp.where(lane == 3, dvs, 0.0))
        # lane 1 (collinear) stays exactly 0.0

    return kernel


# ----------------------------------------------------------------------------
# Device-side forward (single jit: slab pack + one grid-less pallas_call)
# ----------------------------------------------------------------------------
@jax.jit
def _dvs_loss_device(pred_pts, pt_logits, gt_first):
    B, N, _ = pred_pts.shape

    # One slab -> one input DMA into the kernel.
    slab = jnp.stack(
        [pred_pts[..., 0], pred_pts[..., 1],
         gt_first[..., 0], gt_first[..., 1],
         pt_logits],
        axis=0,
    ).astype(jnp.float32)                                     # (5, B, N)

    kernel = _make_dvs_kernel(1.0 / float(B * N), *LOSS_WEIGHTS)

    out_vec = pl.pallas_call(
        kernel,
        out_shape=jax.ShapeDtypeStruct((1, 128), jnp.float32),
        in_specs=[pl.BlockSpec(memory_space=pltpu.MemorySpace.VMEM)],
        out_specs=pl.BlockSpec(memory_space=pltpu.MemorySpace.VMEM),
    )(slab)

    return {
        "loss_pts_aligned": out_vec[0, 0],
        "loss_collinear": out_vec[0, 1],
        "loss_pivot_cls": out_vec[0, 2],
        "dvs_loss": out_vec[0, 3],
    }


def dvs_loss_forward(preds_dict, gt_pts):
    """Mirrors DVSLoss.forward (default hyper-parameters)."""
    pred_pts = jnp.asarray(preds_dict["pts_preds"], jnp.float32)    # (B, N, 2)
    pt_logits = jnp.asarray(preds_dict["pts_logits"], jnp.float32)  # (B, N)
    gt_pts = jnp.asarray(gt_pts, jnp.float32)                       # (B, 1, M, 2)

    B, N, _ = pred_pts.shape
    M = gt_pts.shape[2]
    # The reference module only runs without indexing/DP errors when M == N
    # (and then the DP matching is provably the identity, see header comment).
    assert M == N, "DVSLoss forward requires gt point count == pred point count"

    return _dvs_loss_device(pred_pts, pt_logits, gt_pts[:, 0])


# ----------------------------------------------------------------------------
# Host-side reference (faithful port of the torch forward incl. the numpy DP)
# — used only for verification in __main__, never in the runtime path.
# ----------------------------------------------------------------------------
def pivot_dynamic_matching(cost_matrix):
    m, n = cost_matrix.shape
    min_cost = np.full((m, n), np.inf)
    mem_sort_value = np.full((m, n), np.inf)
    match_res1 = [[] for _ in range(n)]
    match_res2 = [[] for _ in range(n)]
    for j in range(n - m + 1):
        match_res1[j] = [0]
        mem_sort_value[0][j] = cost_matrix[0][0]
        if j == 0:
            min_cost[0][j] = cost_matrix[0][0]
    for i in range(1, m):
        for j in range(i, n - m + i + 1):
            min_cost[i][j] = mem_sort_value[i - 1][j - 1] + cost_matrix[i][j]
            if min_cost[i][j] < mem_sort_value[i][j - 1]:
                mem_sort_value[i][j] = min_cost[i][j]
                if i < m - 1:
                    match_res2[j] = match_res1[j - 1] + [j]
            else:
                mem_sort_value[i][j] = mem_sort_value[i][j - 1]
                if i < m - 1:
                    match_res2[j] = match_res2[j - 1]
        if i < m - 1:
            match_res1, match_res2 = match_res2.copy(), [[] for _ in range(n)]
    return min_cost[-1][-1], match_res1[-2] + [n - 1]


def _softplus(x):
    return np.maximum(x, 0.0) + np.log1p(np.exp(-np.abs(x)))


def reference_forward(pred_pts, pt_logits, gt_pts, loss_weights=LOSS_WEIGHTS):
    B, N, _ = pred_pts.shape
    align_sum, align_cnt = 0.0, 0
    coll_sum, coll_cnt = 0.0, 0
    labels_all = []
    for b in range(B):
        cost = np.abs(pred_pts[b][:, None, :] - gt_pts[b, 0][None, :, :]).sum(-1)
        _, matched = pivot_dynamic_matching(cost)
        matched = np.asarray(matched, dtype=np.int64)
        align_sum += np.abs(pred_pts[b][matched] - gt_pts[b, 0][: len(matched)]).sum()
        align_cnt += len(matched)

        smatched = np.sort(matched)
        all_idx = np.arange(N)
        coll_idx = all_idx[~np.isin(all_idx, smatched)]
        if len(smatched) >= 2 and len(coll_idx) > 0:
            for i in range(len(smatched) - 1):
                s, e = smatched[i], smatched[i + 1]
                between = coll_idx[(coll_idx > s) & (coll_idx < e)]
                if len(between) == 0:
                    continue
                Rn = len(between)
                thetas = (np.arange(1, Rn + 1, dtype=np.float32) / (Rn + 1))[:, None]
                tgt = (1.0 - thetas) * gt_pts[b, 0][i] + thetas * gt_pts[b, 0][i + 1]
                coll_sum += np.abs(pred_pts[b][between] - tgt).sum()
                coll_cnt += Rn

        lab = np.zeros(N, dtype=np.float32)
        lab[matched] = 1.0
        labels_all.append(lab)

    loss_align = align_sum / align_cnt if align_cnt > 0 else 0.0
    loss_coll = coll_sum / coll_cnt if coll_cnt > 0 else 0.0
    y = np.concatenate(labels_all)
    x = pt_logits.reshape(-1)
    loss_cls = np.mean(POS_WEIGHT * y * _softplus(-x) + (1.0 - y) * _softplus(x))
    dvs = (loss_weights[0] * loss_align + loss_weights[1] * loss_coll
           + loss_weights[2] * loss_cls)
    return {"loss_pts_aligned": loss_align, "loss_collinear": loss_coll,
            "loss_pivot_cls": loss_cls, "dvs_loss": dvs}


# ----------------------------------------------------------------------------
if __name__ == "__main__":
    B, N = 2, 20                      # num_pts_per_vec = 20 (module default)
    key = jax.random.PRNGKey(0)
    k1, k2, k3 = jax.random.split(key, 3)
    pred_pts = jax.random.uniform(k1, (B, N, 2), jnp.float32, -1.0, 1.0)
    gt_pts = jax.random.uniform(k2, (B, 1, N, 2), jnp.float32, -1.0, 1.0)
    pt_logits = jax.random.normal(k3, (B, N), jnp.float32)

    preds = {"pts_preds": pred_pts, "pts_logits": pt_logits}
    out = dvs_loss_forward(preds, gt_pts)
    out = jax.tree_util.tree_map(jax.block_until_ready, out)

    ref = reference_forward(np.asarray(pred_pts), np.asarray(pt_logits),
                            np.asarray(gt_pts))
    for k in ("loss_pts_aligned", "loss_collinear", "loss_pivot_cls", "dvs_loss"):
        np.testing.assert_allclose(float(out[k]), float(ref[k]), rtol=1e-4, atol=1e-5)

    print("KERNEL_OK")
</pallas_src>

<mosaic_0001>
module attributes {stable_mosaic.version = 11 : i64} {
  func.func @kernel(%arg0: memref<5x2x20xf32, #tpu.memory_space<vmem>>, %arg1: memref<1x128xf32, #tpu.memory_space<vmem>>) attributes {dimension_semantics = [], scalar_prefetch = 0 : i64, scratch_operands = 0 : i64, tpu.core_type = #tpu.core_type<tc>} {
    %c0 = arith.constant 0 : index
    %c0_0 = arith.constant 0 : index
    %c0_1 = arith.constant 0 : index
    %0 = vector.load %arg0[%c0, %c0_0, %c0_1] : memref<5x2x20xf32, #tpu.memory_space<vmem>>, vector<1x2x20xf32>
    %1 = vector.shape_cast %0 : vector<1x2x20xf32> to vector<2x20xf32>
    %c1 = arith.constant 1 : index
    %c0_2 = arith.constant 0 : index
    %c0_3 = arith.constant 0 : index
    %2 = vector.load %arg0[%c1, %c0_2, %c0_3] : memref<5x2x20xf32, #tpu.memory_space<vmem>>, vector<1x2x20xf32>
    %3 = vector.shape_cast %2 : vector<1x2x20xf32> to vector<2x20xf32>
    %c2 = arith.constant 2 : index
    %c0_4 = arith.constant 0 : index
    %c0_5 = arith.constant 0 : index
    %4 = vector.load %arg0[%c2, %c0_4, %c0_5] : memref<5x2x20xf32, #tpu.memory_space<vmem>>, vector<1x2x20xf32>
    %5 = vector.shape_cast %4 : vector<1x2x20xf32> to vector<2x20xf32>
    %c3 = arith.constant 3 : index
    %c0_6 = arith.constant 0 : index
    %c0_7 = arith.constant 0 : index
    %6 = vector.load %arg0[%c3, %c0_6, %c0_7] : memref<5x2x20xf32, #tpu.memory_space<vmem>>, vector<1x2x20xf32>
    %7 = vector.shape_cast %6 : vector<1x2x20xf32> to vector<2x20xf32>
    %c4 = arith.constant 4 : index
    %c0_8 = arith.constant 0 : index
    %c0_9 = arith.constant 0 : index
    %8 = vector.load %arg0[%c4, %c0_8, %c0_9] : memref<5x2x20xf32, #tpu.memory_space<vmem>>, vector<1x2x20xf32>
    %9 = vector.shape_cast %8 : vector<1x2x20xf32> to vector<2x20xf32>
    %10 = arith.subf %1, %5 : vector<2x20xf32>
    %11 = math.absf %10 : vector<2x20xf32>
    %12 = arith.subf %3, %7 : vector<2x20xf32>
    %13 = math.absf %12 : vector<2x20xf32>
    %14 = arith.addf %11, %13 : vector<2x20xf32>
    %15 = vector.shape_cast %14 : vector<2x20xf32> to vector<1x2x20xf32>
    %cst = arith.constant dense<0.000000e+00> : vector<1xf32>
    %16 = vector.multi_reduction <add>, %15, %cst [1, 2] : vector<1x2x20xf32> to vector<1xf32>
    %17 = vector.shape_cast %16 : vector<1xf32> to vector<1x1x1xf32>
    %18 = vector.extract %17[0, 0, 0] : f32 from vector<1x1x1xf32>
    %cst_10 = arith.constant 2.500000e-02 : f32
    %19 = arith.mulf %18, %cst_10 : f32
    %cst_11 = arith.constant 0.000000e+00 : f32
    %20 = vector.broadcast %cst_11 : f32 to vector<2x20xf32>
    %21 = arith.subf %20, %9 : vector<2x20xf32>
    %cst_12 = arith.constant 0.000000e+00 : f32
    %22 = vector.broadcast %cst_12 : f32 to vector<2x20xf32>
    %23 = arith.maximumf %21, %22 : vector<2x20xf32>
    %24 = math.absf %9 : vector<2x20xf32>
    %cst_13 = arith.constant 0.000000e+00 : f32
    %25 = vector.broadcast %cst_13 : f32 to vector<2x20xf32>
    %26 = arith.subf %25, %24 : vector<2x20xf32>
    %27 = math.exp %26 : vector<2x20xf32>
    %28 = math.log1p %27 : vector<2x20xf32>
    %29 = arith.addf %23, %28 : vector<2x20xf32>
    %cst_14 = arith.constant 2.000000e+00 : f32
    %30 = vector.broadcast %cst_14 : f32 to vector<2x20xf32>
    %31 = arith.mulf %30, %29 : vector<2x20xf32>
    %32 = vector.shape_cast %31 : vector<2x20xf32> to vector<1x2x20xf32>
    %cst_15 = arith.constant dense<0.000000e+00> : vector<1xf32>
    %33 = vector.multi_reduction <add>, %32, %cst_15 [1, 2] : vector<1x2x20xf32> to vector<1xf32>
    %34 = vector.shape_cast %33 : vector<1xf32> to vector<1x1x1xf32>
    %35 = vector.extract %34[0, 0, 0] : f32 from vector<1x1x1xf32>
    %cst_16 = arith.constant 2.500000e-02 : f32
    %36 = arith.mulf %35, %cst_16 : f32
    %cst_17 = arith.constant 3.000000e+00 : f32
    %37 = arith.mulf %cst_17, %19 : f32
    %cst_18 = arith.constant 0.000000e+00 : f32
    %38 = arith.addf %37, %cst_18 : f32
    %cst_19 = arith.constant 2.000000e-01 : f32
    %39 = arith.mulf %cst_19, %36 : f32
    %40 = arith.addf %38, %39 : f32
    %41 = tpu.iota {dimensions = array<i32: 1>} : vector<1x128xi32>
    %c0_i32 = arith.constant 0 : i32
    %42 = vector.broadcast %c0_i32 : i32 to vector<1x128xi32>
    %43 = arith.cmpi eq, %41, %42 : vector<1x128xi32>
    %cst_20 = arith.constant 0.000000e+00 : f32
    %44 = vector.broadcast %19 : f32 to vector<1x128xf32>
    %45 = vector.broadcast %cst_20 : f32 to vector<1x128xf32>
    %46 = arith.select %43, %44, %45 : vector<1x128xi1>, vector<1x128xf32>
    %c2_i32 = arith.constant 2 : i32
    %47 = vector.broadcast %c2_i32 : i32 to vector<1x128xi32>
    %48 = arith.cmpi eq, %41, %47 : vector<1x128xi32>
    %cst_21 = arith.constant 0.000000e+00 : f32
    %49 = vector.broadcast %36 : f32 to vector<1x128xf32>
    %50 = vector.broadcast %cst_21 : f32 to vector<1x128xf32>
    %51 = arith.select %48, %49, %50 : vector<1x128xi1>, vector<1x128xf32>
    %52 = arith.addf %46, %51 : vector<1x128xf32>
    %c3_i32 = arith.constant 3 : i32
    %53 = vector.broadcast %c3_i32 : i32 to vector<1x128xi32>
    %54 = arith.cmpi eq, %41, %53 : vector<1x128xi32>
    %cst_22 = arith.constant 0.000000e+00 : f32
    %55 = vector.broadcast %40 : f32 to vector<1x128xf32>
    %56 = vector.broadcast %cst_22 : f32 to vector<1x128xf32>
    %57 = arith.select %54, %55, %56 : vector<1x128xi1>, vector<1x128xf32>
    %58 = arith.addf %52, %57 : vector<1x128xf32>
    %c0_23 = arith.constant 0 : index
    %c0_24 = arith.constant 0 : index
    %59 = vector.load %arg1[%c0_23, %c0_24] : memref<1x128xf32, #tpu.memory_space<vmem>>, vector<1x128xf32>
    tpu.vector_store %arg1[%c0_23, %c0_24], %58 {strides = array<i32>} : memref<1x128xf32, #tpu.memory_space<vmem>>, vector<1x128xf32>,
    return
  }
}

</mosaic_0001>

<bundles_post_ra>
// kernel: _dvs_loss_device.1
= control target key start
LH: loop header
LB: loop body
LE: loop exit
PB: predicated region body
PF: predicated region fallthrough
CT: control target
= control target key end

     0   :  { %vm22_vm0 = vcmask 156672   ;;  %v66_v42 = vlaneseq  ;;  %s126_s0 = inlined_call_operand.vmem [shape: f32[5,2,20], index: 0, kind: input, shape index: {}]   ;;  %s127_s1 = inlined_call_operand.vmem [shape: f32[1,128], index: 1, kind: output, shape index: {}]  }
   0x1   :  { %v8_v0 = vld [vmem:[%s126_s0] sm:$0x3]  ;;  %v84_v1 = vld [vmem:[%s126_s0 + $0x2] sm:$0x3]  ;;  %v85_v2 = vld [vmem:[%s126_s0 + $0x4] sm:$0x3] }
   0x2   :  { %v86_v3 = vld [vmem:[%s126_s0 + $0x6] sm:$0x3]  ;;  %v17_v4 = vsub.f32 %v8_v0, %v85_v2  ;;  %v87_v5 = vld [vmem:[%s126_s0 + $0x8] sm:$0x3]  ;;  %v67_v43 = vand.u32 127, %v66_v42 }
   0x3   :  { %v19_v6 = vsub.f32 %v84_v1, %v86_v3  ;;  %v36_v7 = vand.u32 2147483647, %v87_v5  ;;  %v34_v18 = vsub.f32 0.0, %v87_v5 }
   0x4   :  { %v18_v8 = vand.u32 2147483647, %v17_v4  ;;  %vm71_vm2 = vcmp.eq.s32.totalorder %v67_v43, 2  ;;  %vm68_vm3 = vcmp.eq.s32.totalorder %v67_v43, 0  ;;  %vm75_vm4 = vcmp.eq.s32.totalorder %v67_v43, 3 }
   0x5   :  { %v20_v9 = vand.u32 2147483647, %v19_v6  ;;  %v37_v10 = vsub.f32 0.0, %v36_v7  ;;  %v35_v22 = vmax.f32 %v34_v18, 0.0 }
   0x7   :  { %v21_v11 = vadd.f32 %v20_v9, %v18_v8  ;;  %v38_v12 = vmul.f32 1.442695, %v37_v10 }
   0x9   :  { %v23_v13 = vsel %vm22_vm0, %v21_v11, 0.0  ;;  %92 = vpow2.f32 %v38_v12 }
   0xa   :  { %24 = vadd.xlane.f32.xlu0 %v23_v13 }
  0x13   :  { %v93_v14 = vpop.eup %92 }
  0x14   :  { %v40_v15 = vadd.f32 1.0, %v93_v14  ;;  %v43_v16 = vmul.f32 -0.5, %v93_v14  ;;  %v46_v19 = vand.u32 2147483647, %v93_v14 }
  0x16   :  { %94 = vlog2.f32 %v40_v15  ;;  %v44_v17 = vadd.f32 1.0, %v43_v16  ;;  %vm47_vm1 = vcmp.lt.f32.partialorder %v46_v19, 0.0004427343 }
  0x18   :  { %v45_v20 = vmul.f32 %v93_v14, %v44_v17 }
  0x20   :  { %v95_v21 = vpop.eup %94 }
  0x21   :  { %v42_v23 = vmul.f32 0.6931472, %v95_v21 }
  0x23   :  { %v48_v24 = vsel %vm47_vm1, %v45_v20, %v42_v23 }
  0x24   :  { %v49_v25 = vadd.f32 %v48_v24, %v35_v22 }
  0x26   :  { %v50_v26 = vmul.f32 2.0, %v49_v25 }
  0x28   :  { %v51_v27 = vsel %vm22_vm0, %v50_v26, 0.0 }
  0x29   :  { %52 = vadd.xlane.f32.xlu0 %v51_v27 }
  0x97   :  { %v25_v28 = vpop.xlane.xlu0 %24 }
  0x98   :  { %v26_v29 = vrot.slane %v25_v28, 4 }
  0x9a   :  { %v27_v30 = vadd.f32 %v26_v29, %v25_v28 }
  0x9c   :  { %v28_v31 = vrot.slane %v27_v30, 2 }
  0x9e   :  { %v29_v32 = vadd.f32 %v28_v31, %v27_v30 }
  0xa0   :  { %v30_v33 = vrot.slane %v29_v32, 1 }
  0xa2   :  { %v31_v34 = vadd.f32 %v30_v33, %v29_v32 }
  0xa4   :  { %88 = vpush %v31_v34 }
  0xb6   :  { %v53_v35 = vpop.xlane.xlu0 %52 }
  0xb7   :  { %v54_v36 = vrot.slane %v53_v35, 4 }
  0xb9   :  { %v55_v37 = vadd.f32 %v54_v36, %v53_v35 }
  0xbb   :  { %v56_v38 = vrot.slane %v55_v37, 2 }
  0xbd   :  { %v57_v39 = vadd.f32 %v56_v38, %v55_v37 }
  0xbf   :  { %v58_v40 = vrot.slane %v57_v39, 1 }
  0xc1   :  { %v59_v41 = vadd.f32 %v58_v40, %v57_v39 }
  0xc3   :  { %90 = vpush %v59_v41 }
  0xd5   :  { %s89_s0 = spop %88 }
  0xd6   :  { %s33_s16 = smul.f32 0.025, %s89_s0 }
  0xd8   :  { %s62_s19 = smul.f32 3.0, %s33_s16  ;;  %v69_v44 = vstv %s33_s16 }
  0xd9   :  { %v70_v47 = vsel %vm68_vm3, %v69_v44, 0.0 }
  0xf4   :  { %s91_s17 = spop %90 }
  0xf5   :  { %s61_s18 = smul.f32 0.025, %s91_s17 }
  0xf7   :  { %s64_s20 = smul.f32 0.2, %s61_s18  ;;  %v72_v45 = vstv %s61_s18 }
  0xf8   :  { %v73_v46 = vsel %vm71_vm2, %v72_v45, 0.0 }
  0xf9   :  { %s65_s21 = sadd.f32 %s64_s20, %s62_s19  ;;  %v74_v48 = vadd.f32 %v73_v46, %v70_v47 }
  0xfb   :  { %v76_v49 = vstv %s65_s21 }
  0xfc   :  { %v77_v50 = vsel %vm75_vm4, %v76_v49, 0.0 }
  0xfd   :  { %v78_v51 = vadd.f32 %v77_v50, %v74_v48 }
  0xff   :  { %79 = vst [vmem:[%s127_s1] sm:$0x1] %v78_v51 }

</bundles_post_ra>
